<compile_context>
chip_gen: v7x
topology: tpu7x:2x2x1
jax: 0.10.0
libtpu: 0.0.40
codegen_flags: <defaults>
</compile_context>

<pallas_src>
import jax
import jax.numpy as jnp
from jax.experimental import pallas as pl
from jax.experimental.pallas import tpu as pltpu


def _copy_kernel(x_ref, o_ref):
    # Straight identity copy of the current (tile_rows, L) VMEM tile.
    o_ref[...] = x_ref[...]


def _tpu_memory_profile():
    """Return (tile_bytes_target, vmem_limit_cap) chosen per TPU generation."""
    try:
        vmem_bytes = int(pltpu.get_tpu_info().vmem_capacity_bytes)
    except Exception:
        vmem_bytes = 64 << 20  # conservative fallback: assume v7x-sized VMEM
    if vmem_bytes >= (100 << 20):
        # v5e / v6e: 128 MiB VMEM -> big tiles, generous scoped limit.
        return 16 << 20, 96 << 20
    # v7x: 64 MiB physical VMEM per TensorCore -> stay comfortably under it.
    return 8 << 20, 48 << 20


def _pallas_identity_copy(flat_2d):
    """Copy a lane-dense (R, L) array through VMEM with large pipelined tiles."""
    R, L = flat_2d.shape
    itemsize = jnp.dtype(flat_2d.dtype).itemsize
    nbytes = R * L * itemsize
    row_bytes = L * itemsize

    tile_target, vmem_cap = _tpu_memory_profile()

    # Native packed sublane multiple: 8 rows f32, 16 rows bf16, 32 rows int8.
    sublane = 8 * max(1, 4 // itemsize)

    # (a) Rows that hit the per-tile byte target (sublane aligned, >= 1 group).
    rows_budget = max(sublane, (tile_target // row_bytes) // sublane * sublane)

    # (b) Minimum grid steps: keep the DMA pipeline overlapped (read i+1 while
    #     writing back i-1) and give v7x's two TensorCores >= 2 tiles each on
    #     larger slabs.  Tiny slabs stay single-step.
    if nbytes > (4 << 20):
        min_steps = 4
    elif nbytes > (1 << 20):
        min_steps = 2
    else:
        min_steps = 1
    if min_steps > 1:
        rows_for_steps = max(sublane, (R // min_steps) // sublane * sublane)
    else:
        rows_for_steps = R

    tile_rows = min(rows_budget, rows_for_steps, R)
    if tile_rows < R:
        tile_rows = max(sublane, (tile_rows // sublane) * sublane)

    steps = pl.cdiv(R, tile_rows)

    # Prefer an even step count so megacore sharding splits evenly across the
    # two TensorCores on v7x (harmless on single-TC parts).
    if steps > 1 and steps % 2 == 1:
        cand_rows = pl.cdiv(R, steps + 1)
        cand_rows = max(sublane, pl.cdiv(cand_rows, sublane) * sublane)
        if pl.cdiv(R, cand_rows) % 2 == 0:
            tile_rows = cand_rows
            steps = pl.cdiv(R, tile_rows)

    tile_bytes = tile_rows * row_bytes
    # Double-buffered input + output ~= 4 x tile_bytes; add headroom, cap per
    # generation (96 MiB on 128-MiB-VMEM parts, 48 MiB on v7x).
    vmem_limit = int(min(vmem_cap, max(32 << 20, 4 * tile_bytes + (8 << 20))))

    return pl.pallas_call(
        _copy_kernel,
        out_shape=jax.ShapeDtypeStruct((R, L), flat_2d.dtype),
        grid_spec=pltpu.PrefetchScalarGridSpec(
            num_scalar_prefetch=0,
            grid=(steps,),
            in_specs=[pl.BlockSpec((tile_rows, L), lambda i: (i, 0))],
            out_specs=pl.BlockSpec((tile_rows, L), lambda i: (i, 0)),
        ),
        compiler_params=pltpu.CompilerParams(
            dimension_semantics=("parallel",),
            vmem_limit_bytes=vmem_limit,
        ),
        cost_estimate=pl.CostEstimate(
            flops=0, transcendentals=0, bytes_accessed=2 * nbytes
        ),
    )(flat_2d)


# Lane widths to try (widest first) for the flattened 2-D slab.
_LANE_CANDIDATES = (4096, 2048, 1024, 512, 256, 128)

# Below this, kernel launch + pipeline prologue dominates a pure copy.
_SMALL_BYPASS_BYTES = 1 << 20


def _pick_lane(total, sublane):
    """Widest lane width keeping both dims tile-aligned (unmasked vld/vst)."""
    for lane in _LANE_CANDIDATES:
        if total % lane == 0:
            rows = total // lane
            if rows >= sublane and rows % sublane == 0:
                return lane
    # Fallback: any exact divisor (rows may be sublane-ragged; still correct,
    # Pallas masks the partial sublanes).
    for lane in _LANE_CANDIDATES:
        if total % lane == 0:
            return lane
    return None


class View:
    """JAX/Pallas equivalent of the PyTorch `view` module."""

    def __init__(self, size, materialize=True,
                 min_bytes_for_kernel=_SMALL_BYPASS_BYTES):
        self.size = tuple(size)
        # torch.view is metadata-only; set materialize=False to skip the copy.
        self.materialize = materialize
        self.min_bytes_for_kernel = min_bytes_for_kernel

    def _resolve_size(self, total):
        size = list(self.size)
        if size.count(-1) > 1:
            raise ValueError("only one dimension can be inferred (-1)")
        if -1 in size:
            idx = size.index(-1)
            known = 1
            for j, s in enumerate(size):
                if j != idx:
                    known *= s
            if known == 0 or total % known != 0:
                raise ValueError(
                    f"cannot view array of {total} elements as {tuple(self.size)}"
                )
            size[idx] = total // known
        else:
            prod = 1
            for s in size:
                prod *= s
            if prod != total:
                raise ValueError(
                    f"cannot view array of {total} elements as {tuple(self.size)}"
                )
        return tuple(size)

    def __call__(self, x):
        total = x.size
        size = self._resolve_size(total)
        itemsize = jnp.dtype(x.dtype).itemsize

        # Row-major flatten: metadata-only for a contiguous input (same element
        # ordering as torch .view).
        flat = x.reshape(-1)

        nbytes = total * itemsize
        if not self.materialize or nbytes < self.min_bytes_for_kernel:
            # Small-tensor bypass / pure view semantics (metadata-only).
            return flat.reshape(size)

        sublane = 8 * max(1, 4 // itemsize)
        lane = _pick_lane(total, sublane)
        if lane is None:
            # Ragged total (not a multiple of 128): view is metadata-only anyway.
            # TODO(synk): optional Pallas copy of the 128-aligned prefix + small
            # tail if a freshly materialized buffer is strictly required.
            return flat.reshape(size)

        flat_2d = flat.reshape(-1, lane)
        copied = _pallas_identity_copy(flat_2d)
        return copied.reshape(size)  # metadata-only reshape (glue)


if __name__ == "__main__":
    key = jax.random.PRNGKey(0)
    k1, k2 = jax.random.split(key)

    # 1) Small NCHW input (typical conv feature map) -> small-tensor bypass.
    x = jax.random.normal(k1, (2, 4, 16, 16), dtype=jnp.float32)
    mod = View(size=(2, -1))
    y = jax.block_until_ready(mod(x))
    ref = x.reshape(2, -1)
    assert y.shape == ref.shape and y.dtype == ref.dtype
    assert bool(jnp.all(y == ref))

    # 2) Same small input, but force the Pallas copy path to verify the kernel
    #    itself on an (8, 256) slab (single-step, fully tile-aligned).
    mod_forced = View(size=(8, 256), min_bytes_for_kernel=0)
    y2 = jax.block_until_ready(mod_forced(x))
    assert bool(jnp.all(y2 == x.reshape(8, 256)))

    # 3) Moderate 2 MiB input -> multi-step pipelined Pallas copy path
    #    (lane = 4096, 2 even grid steps).
    xb = jax.random.normal(k2, (4, 16, 128, 64), dtype=jnp.float32)
    mod_big = View(size=(4, -1))
    y3 = jax.block_until_ready(mod_big(xb))
    refb = xb.reshape(4, -1)
    assert y3.shape == refb.shape and y3.dtype == refb.dtype
    assert bool(jnp.all(y3 == refb))

    print("KERNEL_OK")
</pallas_src>

<mosaic_0001>
module attributes {stable_mosaic.version = 11 : i64} {
  func.func @_copy_kernel(%arg0: i32, %arg1: memref<8x256xf32, #tpu.memory_space<vmem>>, %arg2: memref<8x256xf32, #tpu.memory_space<vmem>>) attributes {dimension_semantics = [#tpu.dimension_semantics<parallel>], iteration_bounds = array<i64: 1>, scalar_prefetch = 0 : i64, scratch_operands = 0 : i64, tpu.core_type = #tpu.core_type<tc>, window_params = [{transform_indices = @transform_0, window_bounds = array<i64: 8, 256>}, {transform_indices = @transform_1, window_bounds = array<i64: 8, 256>}]} {
    %c0 = arith.constant 0 : index
    %c0_0 = arith.constant 0 : index
    %0 = vector.load %arg1[%c0, %c0_0] : memref<8x256xf32, #tpu.memory_space<vmem>>, vector<8x256xf32>
    %c0_1 = arith.constant 0 : index
    %c0_2 = arith.constant 0 : index
    %1 = vector.load %arg2[%c0_1, %c0_2] : memref<8x256xf32, #tpu.memory_space<vmem>>, vector<8x256xf32>
    tpu.vector_store %arg2[%c0_1, %c0_2], %0 {strides = array<i32>} : memref<8x256xf32, #tpu.memory_space<vmem>>, vector<8x256xf32>,
    return
  }
  func.func @transform_0(%arg0: i32) -> (i32, i32) {
    %c0_i32 = arith.constant 0 : i32
    %c0_i32_0 = arith.constant 0 : i32
    return %arg0, %c0_i32 : i32, i32
  }
  func.func @transform_1(%arg0: i32) -> (i32, i32) {
    %c0_i32 = arith.constant 0 : i32
    %c0_i32_0 = arith.constant 0 : i32
    return %arg0, %c0_i32 : i32, i32
  }
}

</mosaic_0001>

<bundles_post_ra>
// kernel: tpu_custom_call.1
= control target key start
LH: loop header
LB: loop body
LE: loop exit
PB: predicated region body
PF: predicated region fallthrough
CT: control target
= control target key end

     0   :  { %6 = vsyncpa [#allocation3], 0  ;;  %s126_s0 = inlined_call_operand.hbm [shape: f32[8,256], index: 0, kind: input, shape index: {}]   ;;  %s127_s1 = inlined_call_operand.hbm [shape: f32[8,256], index: 1, kind: output, shape index: {}]  }
   0x1   :  { %7 = vsyncpa [#allocation4], 0  ;;  %s90_s6 = smov [#allocation2]   ;;  %s42_s10 = scalar_lea.hbm %s126_s0, 256 }
   0x2   :  { %s14_s7 = sshll.u32 %s90_s6, 4  ;;  %p43_p0 = scmp.ne.s32.totalorder %s126_s0, %s42_s10  ;;  %s15_s7 = int_to_ptr.vmem [resolvable:$true] %s14_s7 }
   0x3   :  { %p46_p1 = scmp.lt.u32.totalorder %s42_s10, %s126_s0 }
   0x5   :  { %p48_p2 = pnand %p46_p1, %p43_p0 }
   0x7   :  { %51 = shalt.err (!%p48_p2)
}
   0x8   :  { %s52_s15 = scalar_lea.vmem %s15_s7, 256  ;;  %p57_p4 = scmp.lt.s32.totalorder %s15_s7, %s15_s7 }
   0x9   :  { %p53_p3 = scmp.ne.s32.totalorder %s15_s7, %s52_s15  ;;  %p58_p5 = scmp.lt.s32.totalorder %s52_s15, %s52_s15 }
   0xb   :  { %p59_p6 = por %p58_p5, %p57_p4 }
   0xd   :  { %p60_p7 = pnand %p59_p6, %p53_p3 }
   0xf   :  { %63 = shalt.err (!%p60_p7)
}
  0x10   :  { %17 = dma.hbm_to_vmem [thread:$0]  %s126_s0, 256, %s15_s7, [#allocation3]  }
  0x11   :  { %86 = dma.done.wait [#allocation3], 256  }
  0x12   :  { %87 = vsyncadd [#allocation3], 4294967040  ;;  %s91_s18 = smov [#allocation5]   ;;  %v21_v0 = vld [vmem:[#allocation2] sm:$0xff]  ;;  %v22_v1 = vld [vmem:[#allocation2 + $0x8] sm:$0xff] }
  0x13   :  { %s31_s19 = sshll.u32 %s91_s18, 4  ;;  %23 = vst [vmem:[#allocation5] sm:$0xff] %v21_v0  ;;  %24 = vst [vmem:[#allocation5 + $0x8] sm:$0xff] %v22_v1  ;;  %s32_s19 = int_to_ptr.vmem [resolvable:$true] %s31_s19 }
  0x14   :  { %s64_s20 = scalar_lea.vmem %s32_s19, 256  ;;  %p69_p9 = scmp.lt.s32.totalorder %s32_s19, %s32_s19 }
  0x15   :  { %p65_p8 = scmp.ne.s32.totalorder %s32_s19, %s64_s20  ;;  %p70_p10 = scmp.lt.s32.totalorder %s64_s20, %s64_s20 }
  0x17   :  { %p71_p11 = por %p70_p10, %p69_p9 }
  0x19   :  { %p72_p12 = pnand %p71_p11, %p65_p8 }
  0x1b   :  { %75 = shalt.err (!%p72_p12)
}
  0x1c   :  { %s76_s0 = scalar_lea.hbm %s127_s1, 256 }
  0x1d   :  { %p77_p13 = scmp.ne.s32.totalorder %s127_s1, %s76_s0  ;;  %p80_p0 = scmp.lt.u32.totalorder %s76_s0, %s127_s1 }
  0x1f   :  { %p82_p1 = pnand %p80_p0, %p77_p13 }
  0x21   :  { %85 = shalt.err (!%p82_p1)
}
  0x22   :  { %34 = dma.vmem_to_hbm [thread:$0]  %s32_s19, 256, %s127_s1, [#allocation4]  }
  0x23   :  { %88 = dma.done.wait [#allocation4], 256  }
  0x24   :  { %89 = vsyncadd [#allocation4], 4294967040 }
  0x25   :  { %38 = vsyncpa [#allocation3], 1 }
  0x26   :  { %39 = vsyncpa [#allocation4], 1 }

</bundles_post_ra>
